<compile_context>
chip_gen: v6e
topology: v6e:2x2x1
jax: 0.10.0
libtpu: 0.0.40
codegen_flags: <defaults>
</compile_context>

<pallas_src>
import functools

import jax
import jax.numpy as jnp
from jax.experimental import pallas as pl
from jax.experimental.pallas import tpu as pltpu


# ----------------------------------------------------------------------------
# Kernels
# ----------------------------------------------------------------------------
def _se_scale(pooled, w1_ref, w2_ref):
    """pooled (TB, C) f32 -> fc1 -> LeakyReLU(0.2) -> fc2 -> sigmoid, all f32."""
    h = jnp.dot(pooled, w1_ref[...], preferred_element_type=jnp.float32)   # (TB, Cr)
    h = jnp.where(h > 0, h, 0.2 * h)
    logits = jnp.dot(h, w2_ref[...], preferred_element_type=jnp.float32)   # (TB, C)
    return jax.nn.sigmoid(logits)


def channel_attention_kernel_3d(x_ref, w1_ref, w2_ref, o_ref):
    """One (TB, C, HW) slab (HW a multiple of 128 -> already lane-dense)."""
    hw = x_ref.shape[-1]
    # AdaptiveAvgPool2d(1): reduce straight from the ref with an f32
    # accumulator (no slab-sized f32 temp); scale the tiny pooled tensor.
    pooled = jnp.sum(x_ref[...], axis=-1, dtype=jnp.float32) * (1.0 / hw)  # (TB, C)
    scale = _se_scale(pooled, w1_ref, w2_ref)                              # (TB, C) f32

    # Re-read the slab for the rescale (VMEM re-loads are cheap; keeps the slab
    # live range short).  NOTE: when N % TB != 0 the padded tail rows hold
    # garbage; every op here is row-independent and padded rows are masked on
    # store, so this is safe -- do not add any cross-row reduction here.
    # (bf16 path: the multiply happens in the streaming dtype; scale is rounded
    # once more -- fine at the documented tolerance.)
    o_ref[...] = x_ref[...] * scale.astype(o_ref.dtype)[:, :, None]


def channel_attention_kernel_folded(x_ref, w1_ref, w2_ref, pool_ref, bcast_ref,
                                    o_ref, *, hw):
    """One (TB, C*HW) lane-dense slab (HW NOT a multiple of 128).

    Per-channel pooling and the scale broadcast are done as tiny 0/1 matmuls
    (pool_ref: (C*HW, C) channel indicator, bcast_ref: its transpose), so the
    big load/multiply/store stays on one lane-dense last dim and never lowers
    to masked sub-128 stores, and no in-kernel reshape of the slab is needed.
    """
    pooled = jnp.dot(x_ref[...], pool_ref[...],
                     preferred_element_type=jnp.float32) * (1.0 / hw)      # (TB, C)
    scale = _se_scale(pooled, w1_ref, w2_ref)                              # (TB, C) f32
    scale_full = jnp.dot(scale.astype(o_ref.dtype), bcast_ref[...])       # (TB, C*HW)
    # Same padded-tail-rows note as the 3-D kernel: row-independent math only.
    o_ref[...] = x_ref[...] * scale_full


# ----------------------------------------------------------------------------
# Chip-aware sizing helpers
# ----------------------------------------------------------------------------
def _vmem_capacity_bytes():
    try:
        cap = getattr(pltpu.get_tpu_info(), "vmem_capacity_bytes", None)
        if cap:
            return int(cap)
    except Exception:
        pass
    return 64 << 20  # conservative fallback (v7x-sized)


def _num_tensorcores():
    # v5e/v6e: 1 TensorCore per chip; v7x: 2.
    try:
        kind = jax.devices()[0].device_kind.lower()
        return 2 if "v7" in kind else 1
    except Exception:
        return 1


def _pick_batch_tile(n, per_image_bytes, block_budget_bytes, num_cores):
    """Largest TB such that double-buffered in+out blocks fit the budget."""
    # 2x (double buffer) x 2 (input block + output block) = 4x per-block bytes.
    tb = max(1, block_budget_bytes // (4 * per_image_bytes))
    tb = min(tb, n)
    if num_cores >= 2:
        # Dual-TensorCore chip (v7x): keep >=2 grid steps per core when N
        # allows so both cores get work AND each core's DMA stays
        # double-buffered across steps.  Single-core chips (v5e/v6e) skip this
        # clamp entirely -- shrinking the tile there only adds step overhead.
        if n >= 2 * num_cores:
            tb = min(tb, pl.cdiv(n, 2 * num_cores))
        elif n >= num_cores:
            tb = min(tb, pl.cdiv(n, num_cores))
    return int(tb)


# ----------------------------------------------------------------------------
# Wrapper
# ----------------------------------------------------------------------------
def channel_attention_block(x, w1, w2, *, block_budget_bytes=None, inplace=False):
    """x: (N, C, H, W); w1: (C, C//r); w2: (C//r, C), f32, (in, out) layout.

    x may be float32 or bfloat16; the output matches x's dtype while the pool /
    FC / sigmoid compute runs in float32 inside the kernel.
    """
    n, c, h, w = x.shape
    hw = h * w
    cr = w1.shape[1]
    itemsize = jnp.dtype(x.dtype).itemsize

    vmem_cap = _vmem_capacity_bytes()
    if block_budget_bytes is None:
        # ~0.75 x physical VMEM: ~96 MiB on v5e/v6e (128 MiB), ~48 MiB on v7x.
        block_budget_bytes = int(0.75 * vmem_cap)

    num_cores = _num_tensorcores()
    per_image_bytes = c * hw * itemsize
    tb = _pick_batch_tile(n, per_image_bytes, block_budget_bytes, num_cores)
    # TODO(synk): if a single (C, HW) image slab ever exceeds the block budget
    # (huge C*HW against v7x's 64 MiB VMEM), switch to a two-pass
    # pool-then-rescale structure that also tiles the HW axis.

    weight_bytes = 2 * c * cr * jnp.dtype(w1.dtype).itemsize

    # Lane-dense folded path: when HW is not a multiple of 128, a (.., C, HW)
    # block lowers to masked vst.msk partial stores (the biggest measured
    # lever).  Fold (C, HW) into one last dim when the 0/1 pooling matrices
    # stay small (typical SE shapes: 7x7, 14x14).
    pool_mat_bytes = c * hw * c * itemsize
    use_folded = (hw % 128 != 0) and (pool_mat_bytes <= (4 << 20))
    if use_folded and tb < n:
        tb_f = (tb // 8) * 8            # folded block: 2nd-minor dim 8-aligned
        if tb_f == 0:
            use_folded = False          # fall back to the 3-D (masked-store) path
        else:
            tb = tb_f

    grid = (pl.cdiv(n, tb),)
    block_bytes = tb * per_image_bytes

    cost = pl.CostEstimate(
        flops=2 * n * (c * cr + cr * c) + 2 * n * c * hw,
        transcendentals=n * c,
        bytes_accessed=2 * n * c * hw * itemsize + weight_bytes
        + (2 * pool_mat_bytes if use_folded else 0),
    )

    if use_folded:
        # (C*HW, C) channel-indicator matrix (0/1, exact in bf16 and f32) and
        # its transpose; both resident in VMEM across grid steps.
        pool_mat = jnp.repeat(jnp.eye(c, dtype=x.dtype), hw, axis=0)   # (C*HW, C)
        bcast_mat = pool_mat.T                                         # (C, C*HW)
        x_in = x.reshape(n, c * hw)
        kernel = functools.partial(channel_attention_kernel_folded, hw=hw)
        in_specs = [
            pl.BlockSpec((tb, c * hw), lambda i: (i, 0)),
            pl.BlockSpec((c, cr), lambda i: (0, 0)),
            pl.BlockSpec((cr, c), lambda i: (0, 0)),
            pl.BlockSpec((c * hw, c), lambda i: (0, 0)),
            pl.BlockSpec((c, c * hw), lambda i: (0, 0)),
        ]
        out_spec = pl.BlockSpec((tb, c * hw), lambda i: (i, 0))
        out_shape = jax.ShapeDtypeStruct((n, c * hw), x.dtype)
        operands = (x_in, w1, w2, pool_mat, bcast_mat)
        extra_bytes = 2 * pool_mat_bytes
    else:
        x_in = x.reshape(n, c, hw)
        kernel = channel_attention_kernel_3d
        in_specs = [
            # x: large batch-folded slab, streamed / double-buffered.
            pl.BlockSpec((tb, c, hw), lambda i: (i, 0, 0)),
            # Weights: constant block index -> fetched once, stay resident.
            pl.BlockSpec((c, cr), lambda i: (0, 0)),
            pl.BlockSpec((cr, c), lambda i: (0, 0)),
        ]
        out_spec = pl.BlockSpec((tb, c, hw), lambda i: (i, 0, 0))
        out_shape = jax.ShapeDtypeStruct((n, c, hw), x.dtype)
        operands = (x_in, w1, w2)
        extra_bytes = 0

    # Explicit VMEM limit: double-buffered in+out blocks + resident weights /
    # pooling matrices + headroom, clamped to the chip's physical VMEM so a
    # raised block budget stays safe on v7x's 64 MiB as well as v5e/v6e's 128.
    vmem_limit = 4 * block_bytes + 4 * weight_bytes + 2 * extra_bytes + (8 << 20)
    vmem_limit = max(vmem_limit, 16 << 20)
    vmem_limit = int(min(vmem_limit, vmem_cap - (8 << 20)))

    out = pl.pallas_call(
        kernel,
        out_shape=out_shape,
        grid_spec=pltpu.PrefetchScalarGridSpec(
            num_scalar_prefetch=0,
            grid=grid,
            in_specs=in_specs,
            out_specs=out_spec,
        ),
        # Optionally alias the output onto x so no second N*C*HW HBM buffer is
        # allocated (use when the caller no longer needs x).
        input_output_aliases=({0: 0} if inplace else {}),
        compiler_params=pltpu.CompilerParams(
            dimension_semantics=("parallel",),
            vmem_limit_bytes=vmem_limit,
        ),
        cost_estimate=cost,
    )(*operands)

    return out.reshape(n, c, h, w)


# ----------------------------------------------------------------------------
# Pure-JAX reference (replicates the PyTorch forward, f32 math)
# ----------------------------------------------------------------------------
def reference(x, w1, w2):
    xf = x.astype(jnp.float32)
    pooled = jnp.mean(xf, axis=(2, 3))                    # (N, C)
    h = pooled @ w1
    h = jnp.where(h > 0, h, 0.2 * h)
    scale = jax.nn.sigmoid(h @ w2)                        # (N, C)
    return xf * scale[:, :, None, None]


if __name__ == "__main__":
    key = jax.random.PRNGKey(0)
    kx, k1, k2, kx2, k3, k4 = jax.random.split(key, 6)

    # --- Test 1: 128-aligned HW (fast 3-D path), f32 then bf16 streaming -----
    N, C, H, W = 2, 4, 16, 16
    Cr = C // 4
    x = jax.random.normal(kx, (N, C, H, W), dtype=jnp.float32)
    w1 = jax.random.normal(k1, (C, Cr), dtype=jnp.float32) * 0.5
    w2 = jax.random.normal(k2, (Cr, C), dtype=jnp.float32) * 0.5

    out = jax.block_until_ready(channel_attention_block(x, w1, w2))
    ref = reference(x, w1, w2)
    assert out.shape == (N, C, H, W)
    assert jnp.allclose(out, ref, atol=1e-5, rtol=1e-5), "f32 mismatch vs reference"

    x_bf16 = x.astype(jnp.bfloat16)
    ref_bf16 = reference(x_bf16.astype(jnp.float32), w1, w2)
    out_bf16 = jax.block_until_ready(
        channel_attention_block(x_bf16, w1, w2, inplace=True))
    assert out_bf16.dtype == jnp.bfloat16
    assert jnp.allclose(out_bf16.astype(jnp.float32), ref_bf16,
                        atol=5e-2, rtol=5e-2), "bf16 mismatch vs reference"

    # --- Test 2: HW not a multiple of 128 (7x7) -> lane-dense folded path ----
    N2, C2, H2, W2 = 2, 8, 7, 7
    Cr2 = C2 // 4
    x2 = jax.random.normal(kx2, (N2, C2, H2, W2), dtype=jnp.float32)
    w1b = jax.random.normal(k3, (C2, Cr2), dtype=jnp.float32) * 0.5
    w2b = jax.random.normal(k4, (Cr2, C2), dtype=jnp.float32) * 0.5
    out2 = jax.block_until_ready(channel_attention_block(x2, w1b, w2b))
    ref2 = reference(x2, w1b, w2b)
    assert out2.shape == (N2, C2, H2, W2)
    assert jnp.allclose(out2, ref2, atol=1e-4, rtol=1e-4), "folded-path mismatch"

    print("KERNEL_OK")
</pallas_src>

<mosaic_0001>
module attributes {stable_mosaic.version = 11 : i64} {
  func.func @channel_attention_kernel_3d(%arg0: i32, %arg1: memref<2x4x256xf32, #tpu.memory_space<vmem>>, %arg2: memref<4x1xf32, #tpu.memory_space<vmem>>, %arg3: memref<1x4xf32, #tpu.memory_space<vmem>>, %arg4: memref<2x4x256xf32, #tpu.memory_space<vmem>>) attributes {dimension_semantics = [#tpu.dimension_semantics<parallel>], iteration_bounds = array<i64: 1>, scalar_prefetch = 0 : i64, scratch_operands = 0 : i64, tpu.core_type = #tpu.core_type<tc>, window_params = [{transform_indices = @transform_0, window_bounds = array<i64: 2, 4, 256>}, {pipeline_mode = #tpu.pipeline_mode<synchronous>, transform_indices = @transform_1, window_bounds = array<i64: 4, 1>}, {pipeline_mode = #tpu.pipeline_mode<synchronous>, transform_indices = @transform_2, window_bounds = array<i64: 1, 4>}, {transform_indices = @transform_3, window_bounds = array<i64: 2, 4, 256>}]} {
    %c0 = arith.constant 0 : index
    %c0_0 = arith.constant 0 : index
    %c0_1 = arith.constant 0 : index
    %0 = vector.load %arg1[%c0, %c0_0, %c0_1] : memref<2x4x256xf32, #tpu.memory_space<vmem>>, vector<2x4x256xf32>
    %cst = arith.constant dense<0.000000e+00> : vector<2x4xf32>
    %1 = vector.multi_reduction <add>, %0, %cst [2] : vector<2x4x256xf32> to vector<2x4xf32>
    %cst_2 = arith.constant 3.906250e-03 : f32
    %2 = vector.broadcast %cst_2 : f32 to vector<2x4xf32>
    %3 = arith.mulf %1, %2 : vector<2x4xf32>
    %c0_3 = arith.constant 0 : index
    %c0_4 = arith.constant 0 : index
    %4 = vector.load %arg2[%c0_3, %c0_4] : memref<4x1xf32, #tpu.memory_space<vmem>>, vector<4x1xf32>
    %cst_5 = arith.constant dense<0.000000e+00> : vector<2x1xf32>
    %5 = tpu.matmul %3, %4, %cst_5 {dimension_numbers = #tpu.dot_dimension_numbers<[1], [0], [0], [1], [0, 0, 1, 1], [], []>} : vector<2x4xf32>, vector<4x1xf32>, vector<2x1xf32> -> vector<2x1xf32>
    %cst_6 = arith.constant 0.000000e+00 : f32
    %6 = vector.broadcast %cst_6 : f32 to vector<2x1xf32>
    %7 = arith.cmpf ogt, %5, %6 : vector<2x1xf32>
    %cst_7 = arith.constant 2.000000e-01 : f32
    %8 = vector.broadcast %cst_7 : f32 to vector<2x1xf32>
    %9 = arith.mulf %8, %5 : vector<2x1xf32>
    %10 = arith.select %7, %5, %9 : vector<2x1xi1>, vector<2x1xf32>
    %c0_8 = arith.constant 0 : index
    %c0_9 = arith.constant 0 : index
    %11 = vector.load %arg3[%c0_8, %c0_9] : memref<1x4xf32, #tpu.memory_space<vmem>>, vector<1x4xf32>
    %cst_10 = arith.constant dense<0.000000e+00> : vector<2x4xf32>
    %12 = tpu.matmul %10, %11, %cst_10 {dimension_numbers = #tpu.dot_dimension_numbers<[1], [0], [0], [1], [0, 0, 1, 1], [], []>} : vector<2x1xf32>, vector<1x4xf32>, vector<2x4xf32> -> vector<2x4xf32>
    %13 = arith.negf %12 : vector<2x4xf32>
    %14 = math.exp %13 : vector<2x4xf32>
    %cst_11 = arith.constant 1.000000e+00 : f32
    %15 = vector.broadcast %cst_11 : f32 to vector<2x4xf32>
    %16 = arith.addf %15, %14 : vector<2x4xf32>
    %17 = arith.divf %15, %16 : vector<2x4xf32>
    %c0_12 = arith.constant 0 : index
    %c0_13 = arith.constant 0 : index
    %c0_14 = arith.constant 0 : index
    %18 = vector.load %arg1[%c0_12, %c0_13, %c0_14] : memref<2x4x256xf32, #tpu.memory_space<vmem>>, vector<2x4x256xf32>
    %19 = vector.shape_cast %17 : vector<2x4xf32> to vector<2x4x1xf32>
    %20 = vector.broadcast %19 : vector<2x4x1xf32> to vector<2x4x256xf32>
    %21 = arith.mulf %18, %20 : vector<2x4x256xf32>
    %c0_15 = arith.constant 0 : index
    %c0_16 = arith.constant 0 : index
    %c0_17 = arith.constant 0 : index
    %22 = vector.load %arg4[%c0_15, %c0_16, %c0_17] : memref<2x4x256xf32, #tpu.memory_space<vmem>>, vector<2x4x256xf32>
    tpu.vector_store %arg4[%c0_15, %c0_16, %c0_17], %21 {strides = array<i32>} : memref<2x4x256xf32, #tpu.memory_space<vmem>>, vector<2x4x256xf32>,
    return
  }
  func.func @transform_0(%arg0: i32) -> (i32, i32, i32) {
    %c0_i32 = arith.constant 0 : i32
    %c0_i32_0 = arith.constant 0 : i32
    %c0_i32_1 = arith.constant 0 : i32
    return %arg0, %c0_i32, %c0_i32_0 : i32, i32, i32
  }
  func.func @transform_1(%arg0: i32) -> (i32, i32) {
    %c0_i32 = arith.constant 0 : i32
    %c0_i32_0 = arith.constant 0 : i32
    %c0_i32_1 = arith.constant 0 : i32
    return %c0_i32, %c0_i32_0 : i32, i32
  }
  func.func @transform_2(%arg0: i32) -> (i32, i32) {
    %c0_i32 = arith.constant 0 : i32
    %c0_i32_0 = arith.constant 0 : i32
    %c0_i32_1 = arith.constant 0 : i32
    return %c0_i32, %c0_i32_0 : i32, i32
  }
  func.func @transform_3(%arg0: i32) -> (i32, i32, i32) {
    %c0_i32 = arith.constant 0 : i32
    %c0_i32_0 = arith.constant 0 : i32
    %c0_i32_1 = arith.constant 0 : i32
    return %arg0, %c0_i32, %c0_i32_0 : i32, i32, i32
  }
}

</mosaic_0001>

<bundles_post_ra>
// kernel: tpu_custom_call.1
= control target key start
LH: loop header
LB: loop body
LE: loop exit
PB: predicated region body
PF: predicated region fallthrough
CT: control target
= control target key end

     0   :  { %8 = vsyncpa [#allocation3], 0  ;;  %s420_s0 = inlined_call_operand.hbm [shape: f32[2,4,256], index: 0, kind: input, shape index: {}]   ;;  %s421_s1 = inlined_call_operand.vmem [shape: f32[4,1], index: 1, kind: input, shape index: {}]   ;;  %s422_s2 = inlined_call_operand.vmem [shape: f32[1,4], index: 2, kind: input, shape index: {}]   ;;  %s423_s3 = inlined_call_operand.hbm [shape: f32[2,4,256], index: 3, kind: output, shape index: {}]  }
   0x1   :  { %9 = vsyncpa [#allocation4], 0  ;;  %s358_s12 = smov [#allocation2]  }
   0x2   :  { %s15_s13 = sshll.u32 %s358_s12, 4  ;;  %s16_s13 = int_to_ptr.vmem [resolvable:$true] %s15_s13 }
   0x3   :  { %s322_s14 = scalar_lea.vmem %s16_s13, 256  ;;  %p327_p1 = scmp.lt.s32.totalorder %s16_s13, %s16_s13 }
   0x4   :  { %p323_p0 = scmp.ne.s32.totalorder %s16_s13, %s322_s14  ;;  %p328_p2 = scmp.lt.s32.totalorder %s322_s14, %s322_s14 }
   0x6   :  { %p329_p3 = por %p328_p2, %p327_p1 }
   0x8   :  { %p330_p4 = pnand %p329_p3, %p323_p0 }
   0xa   :  { %333 = shalt.err (!%p330_p4)
}
   0xb   :  { %s359_s15 = smov 128   ;;  %s360_s16 = smov 8  }
   0xc   :  { %21 = dma.hbm_to_vmem [thread:$0]  %s420_s0, 256, %s16_s13, [#allocation3], %s359_s15, %s359_s15, %s360_s16  }
   0xd   :  { %354 = dma.done.wait [#allocation3], 256  }
   0xe   :  { %355 = vsyncadd [#allocation3], 4294967040  ;;  %vm37_vm0 = vcmask 1043456   ;;  %v391_v0 = vld [vmem:[#allocation2] sm:$0xff]  ;;  %v393_v1 = vld [vmem:[#allocation2 + $0x8] sm:$0xff]  ;;  %v361_v11 = vmov 0.0   ;;  %v53_v12 = vlaneseq }
   0xf   :  { %v33_v2 = vcombine.high %v391_v0, %v391_v0  ;;  %v38_v3 = vsel %vm37_vm0, %v391_v0, 0.0  ;;  %v34_v4 = vcombine.high %v393_v1, %v393_v1  ;;  %v43_v6 = vsel %vm37_vm0, %v393_v1, 0.0  ;;  %v50_v10 = vld [vmem:[%s421_s1] sm:$0xf]  ;;  %291 = vmatprep.subr.mxu0 %v361_v11  ;;  %296 = vmatprep.subr.mxu1 %v361_v11 }
  0x10   :  { %vm362_vm1 = vmmov 0   ;;  %292 = vmatpush3.msk.msra.mxu0 %vm37_vm0, %v50_v10  ;;  %v54_v13 = vand.u32 127, %v53_v12  ;;  %v56_v14 = vshrl.u32 %v53_v12, 7  ;;  %vm63_vm2 = vcmask 1041409   ;;  %v144_v23 = vld [vmem:[%s422_s2] sm:$0x1] }
  0x11   :  { %v39_v5 = vsel %vm37_vm0, %v33_v2, 0.0  ;;  %v44_v7 = vsel %vm37_vm0, %v34_v4, 0.0  ;;  %293 = vmatprep.mubr.msk.f32.mxu0 %vm362_vm1, %v361_v11  ;;  %298 = vmatprep.mubr.msk.f32.mxu1 %vm362_vm1, %v361_v11  ;;  %vm65_vm3 = vcmask 31744   ;;  %vm149_vm4 = vcmask 1040384   ;;  %s364_s2 = smov [#allocation5]  }
  0x12   :  { %v40_v8 = vadd.f32 %v39_v5, %v38_v3  ;;  %v45_v9 = vadd.f32 %v44_v7, %v43_v6  ;;  %v57_v16 = vsub.s32 %v54_v13, %v56_v14  ;;  %297 = vmatpush3.msk.msra.mxu1 %vm149_vm4, %v144_v23  ;;  %vm145_vm6 = vcmask 7168   ;;  %s270_s21 = sshll.u32 %s364_s2, 4  ;;  %s271_s21 = int_to_ptr.vmem [resolvable:$true] %s270_s21 }
  0x13   :  { %v231_v33 = vsub.s32 0, %v56_v14  ;;  %v238_v36 = vsub.s32 1, %v56_v14  ;;  %v363_v38 = vmov 839922192   ;;  %s334_s22 = scalar_lea.vmem %s271_s21, 256  ;;  %p339_p6 = scmp.lt.s32.totalorder %s271_s21, %s271_s21 }
  0x14   :  { %41 = vadd.xlane.f32.xlu0 %v40_v8  ;;  %v246_v39 = vunpack.c.l.s4 %v363_v38  ;;  %p335_p5 = scmp.ne.s32.totalorder %s271_s21, %s334_s22  ;;  %p340_p7 = scmp.lt.s32.totalorder %s334_s22, %s334_s22 }
  0x16   :  { %v247_v40 = vunpack.c.0.s8 %v246_v39  ;;  %p341_p8 = por %p340_p7, %p339_p6 }
  0x18   :  { %46 = vadd.xlane.f32.xlu0 %v45_v9  ;;  %v250_v41 = vsub.s32 %v247_v40, %v56_v14  ;;  %p342_p9 = pnand %p341_p8, %p335_p5 }
  0x9d   :  { %v42_v15 = vpop.xlane.xlu0 %41 }
  0x9e   :  { %v48_v17 = vmul.f32 0.00390625, %v42_v15 }
  0xa0   :  { %v58_v20 = vrot.slane %v48_v17, %v57_v16 }
  0xa1   :  { %v47_v18 = vpop.xlane.xlu0 %46 }
  0xa2   :  { %v49_v19 = vmul.f32 0.00390625, %v47_v18 }
  0xa4   :  { %v62_v21 = vrot.slane %v49_v19, %v57_v16 }
  0xa6   :  { %v64_v22 = vsel %vm63_vm2, %v62_v21, %v58_v20 }
  0xa7   :  { %294 = vmatmul.mubr.msk.f32.vlgmr.msra.gmra.mxu0 %vm65_vm3, %v64_v22 }
 0x167   :  { %v137_v24 = vpop.f32.mrf.mxu0 }
 0x168   :  { %vm141_vm5 = vcmp.gt.f32.partialorder %v137_v24, 0.0  ;;  %v142_v25 = vmul.f32 0.2, %v137_v24 }
 0x169   :  { %v295_v26 = vpop.f32.mrf.mxu0 }
 0x16a   :  { %v143_v27 = vsel %vm141_vm5, %v137_v24, %v142_v25 }
 0x16b   :  { %299 = vmatmul.mubr.msk.f32.vlgmr.msra.gmra.mxu1 %vm145_vm6, %v143_v27 }
 0x22b   :  { %v219_v28 = vpop.f32.mrf.mxu1 }
 0x22c   :  { %v286_v29 = vmul.f32 -1.442695, %v219_v28 }
 0x22d   :  { %v300_v30 = vpop.f32.mrf.mxu1 }
 0x22e   :  { %310 = vpow2.f32 %v286_v29 }
 0x23b   :  { %v311_v31 = vpop.eup %310 }
 0x23c   :  { %v226_v32 = vadd.f32 1.0, %v311_v31 }
 0x23e   :  { %312 = vrcp.f32 %v226_v32 }
 0x24b   :  { %v313_v34 = vpop.eup %312 }
 0x24c   :  { %v232_v35 = vrot.slane %v313_v34, %v231_v33  ;;  %v239_v37 = vrot.slane %v313_v34, %v238_v36 }
 0x24e   :  { %234 = vbcast.lane.b32.xlu1 %v232_v35, 256 }
 0x252   :  { %241 = vbcast.lane.b32.xlu1 %v239_v37, 256 }
 0x2c0   :  { %v235_v42 = vpop.permute.xlu1 %234 }
 0x2c1   :  { %v251_v43 = vrot.slane %v235_v42, %v250_v41 }
 0x2c3   :  { %v261_v44 = vmul.f32 %v251_v43, %v391_v0 }
 0x2c4   :  { %v242_v45 = vpop.permute.xlu1 %241 }
 0x2c5   :  { %263 = vst [vmem:[#allocation5] sm:$0xff] %v261_v44  ;;  %v258_v46 = vrot.slane %v242_v45, %v250_v41 }
 0x2c7   :  { %v262_v47 = vmul.f32 %v258_v46, %v393_v1 }
 0x2c9   :  { %264 = vst [vmem:[#allocation5 + $0x8] sm:$0xff] %v262_v47 }
 0x2ca   :  { %345 = shalt.err (!%p342_p9)
}
 0x2cb   :  { %276 = dma.vmem_to_hbm [thread:$0]  %s271_s21, 256, %s423_s3, [#allocation4], %s359_s15, %s359_s15, %s360_s16  }
 0x2cc   :  { %356 = dma.done.wait [#allocation4], 256  }
 0x2cd   :  { %357 = vsyncadd [#allocation4], 4294967040 }
 0x2ce   :  { %280 = vsyncpa [#allocation3], 1 }
 0x2cf   :  { %281 = vsyncpa [#allocation4], 1 }

</bundles_post_ra>
